<compile_context>
chip_gen: v7x
topology: tpu7x:2x2x1
jax: 0.10.0
libtpu: 0.0.40
codegen_flags: <defaults>
</compile_context>

<pallas_src>
import functools

import jax
import jax.numpy as jnp
from jax.experimental import pallas as pl
from jax.experimental.pallas import tpu as pltpu


def _triplet_margin_kernel(a_ref, p_ref, n_ref, out_ref, *,
                           margin, eps, batch, block_rows):
    i = pl.program_id(0)

    a = a_ref[...].astype(jnp.float32)

    # Positive distance fully first, then negative: shorter live ranges,
    # less vreg pressure at large tiles. The axis=1 reduce runs on the XLU.
    p = p_ref[...].astype(jnp.float32)
    dp = a - p
    d_p = jnp.sqrt(jnp.sum(dp * dp, axis=1, keepdims=True) + eps)  # (TB, 1)

    n = n_ref[...].astype(jnp.float32)
    dn = a - n
    d_n = jnp.sqrt(jnp.sum(dn * dn, axis=1, keepdims=True) + eps)  # (TB, 1)

    hinge = jnp.maximum(margin + d_p - d_n, 0.0)                   # (TB, 1)

    # Zero out padded rows of a ragged last tile (select, so garbage/NaN in the
    # padded region is discarded, not propagated).
    row = i * block_rows + jax.lax.broadcasted_iota(jnp.int32, hinge.shape, 0)
    hinge = jnp.where(row < batch, hinge, 0.0)

    partial = jnp.sum(hinge)
    # Lane-dense, unmasked (8,128) store of this tile's partial hinge sum.
    out_ref[...] = jnp.full(out_ref.shape, partial, dtype=out_ref.dtype)


def triplet_margin_loss(anchor, positive, negative, margin=0.5, block_rows=None):
    """Pallas TPU implementation of TripletMarginLoss.forward."""
    assert anchor.shape == positive.shape == negative.shape
    assert anchor.ndim == 2
    B, D = anchor.shape
    eps = 1e-4 / D  # matches PairwiseDistance eps = 1e-4 / x1.size(1)
    itemsize = jnp.dtype(anchor.dtype).itemsize

    if block_rows is None:
        # ~12 MiB budget for the 3 double-buffered input tiles.
        budget = 12 * 1024 * 1024
        tb = budget // (3 * 2 * D * itemsize)
        tb = max(8, min(int(tb), 1024))
    else:
        tb = max(8, int(block_rows))
    tb = (tb // 8) * 8          # sublane-aligned tile rows
    if B <= tb:
        tb = B                  # single tile: block == full array dims (always legal)
    num_tiles = pl.cdiv(B, tb)

    kernel = functools.partial(
        _triplet_margin_kernel,
        margin=float(margin), eps=float(eps), batch=B, block_rows=tb,
    )

    in_spec = pl.BlockSpec((tb, D), lambda i: (i, 0))
    cost = pl.CostEstimate(
        flops=6 * B * D + 8 * B,
        transcendentals=2 * B,
        bytes_accessed=3 * B * D * itemsize + num_tiles * 8 * 128 * 4,
    )

    partials = pl.pallas_call(
        kernel,
        out_shape=jax.ShapeDtypeStruct((num_tiles, 8, 128), jnp.float32),
        grid=(num_tiles,),
        in_specs=[in_spec, in_spec, in_spec],
        out_specs=pl.BlockSpec((1, 8, 128), lambda i: (i, 0, 0)),
        compiler_params=pltpu.CompilerParams(
            dimension_semantics=("parallel",),
            vmem_limit_bytes=32 * 1024 * 1024,
        ),
        cost_estimate=cost,
    )(anchor, positive, negative)

    # Sum-of-partials / true B (exact mean even when B % TB != 0).
    return jnp.sum(partials[:, 0, 0]) / B


def triplet_margin_loss_ref(anchor, positive, negative, margin=0.5):
    """Pure-JAX reference mirroring the PyTorch module."""
    eps = 1e-4 / anchor.shape[1]
    d_p = jnp.sqrt(jnp.sum((anchor - positive) ** 2, axis=1) + eps)
    d_n = jnp.sqrt(jnp.sum((anchor - negative) ** 2, axis=1) + eps)
    return jnp.mean(jnp.maximum(margin + d_p - d_n, 0.0))


if __name__ == "__main__":
    key = jax.random.PRNGKey(0)
    k1, k2, k3 = jax.random.split(key, 3)

    margin = 0.5

    # Case 1: small batch of 128-dim embeddings (single-tile path).
    B, D = 8, 128
    anchor = jax.random.normal(k1, (B, D), dtype=jnp.float32)
    positive = jax.random.normal(k2, (B, D), dtype=jnp.float32)
    negative = jax.random.normal(k3, (B, D), dtype=jnp.float32)

    loss = triplet_margin_loss(anchor, positive, negative, margin)
    jax.block_until_ready(loss)
    ref = triplet_margin_loss_ref(anchor, positive, negative, margin)
    assert jnp.allclose(loss, ref, rtol=1e-5, atol=1e-5), (loss, ref)

    # Case 2: multi-tile + ragged last tile (forces block_rows=8 over B=20).
    B2, D2 = 20, 64
    a2 = jax.random.normal(k1, (B2, D2), dtype=jnp.float32)
    p2 = jax.random.normal(k2, (B2, D2), dtype=jnp.float32)
    n2 = jax.random.normal(k3, (B2, D2), dtype=jnp.float32)
    loss2 = triplet_margin_loss(a2, p2, n2, margin, block_rows=8)
    jax.block_until_ready(loss2)
    ref2 = triplet_margin_loss_ref(a2, p2, n2, margin)
    assert jnp.allclose(loss2, ref2, rtol=1e-5, atol=1e-5), (loss2, ref2)

    print("KERNEL_OK")
</pallas_src>

<mosaic_0001>
module attributes {stable_mosaic.version = 11 : i64} {
  func.func @_triplet_margin_kernel(%arg0: i32, %arg1: memref<8x128xf32, #tpu.memory_space<vmem>>, %arg2: memref<8x128xf32, #tpu.memory_space<vmem>>, %arg3: memref<8x128xf32, #tpu.memory_space<vmem>>, %arg4: memref<1x8x128xf32, #tpu.memory_space<vmem>>) attributes {dimension_semantics = [#tpu.dimension_semantics<parallel>], iteration_bounds = array<i64: 1>, scalar_prefetch = 0 : i64, scratch_operands = 0 : i64, tpu.core_type = #tpu.core_type<tc>, window_params = [{transform_indices = @transform_0, window_bounds = array<i64: 8, 128>}, {transform_indices = @transform_1, window_bounds = array<i64: 8, 128>}, {transform_indices = @transform_2, window_bounds = array<i64: 8, 128>}, {transform_indices = @transform_3, window_bounds = array<i64: 1, 8, 128>}]} {
    %c0 = arith.constant 0 : index
    %c0_0 = arith.constant 0 : index
    %0 = vector.load %arg1[%c0, %c0_0] : memref<8x128xf32, #tpu.memory_space<vmem>>, vector<8x128xf32>
    %c0_1 = arith.constant 0 : index
    %c0_2 = arith.constant 0 : index
    %1 = vector.load %arg2[%c0_1, %c0_2] : memref<8x128xf32, #tpu.memory_space<vmem>>, vector<8x128xf32>
    %2 = arith.subf %0, %1 : vector<8x128xf32>
    %3 = arith.mulf %2, %2 : vector<8x128xf32>
    %cst = arith.constant dense<0.000000e+00> : vector<8xf32>
    %4 = vector.multi_reduction <add>, %3, %cst [1] : vector<8x128xf32> to vector<8xf32>
    %5 = vector.shape_cast %4 : vector<8xf32> to vector<8x1xf32>
    %cst_3 = arith.constant 7.812500e-07 : f32
    %6 = vector.broadcast %cst_3 : f32 to vector<8x1xf32>
    %7 = arith.addf %5, %6 : vector<8x1xf32>
    %8 = math.sqrt %7 : vector<8x1xf32>
    %c0_4 = arith.constant 0 : index
    %c0_5 = arith.constant 0 : index
    %9 = vector.load %arg3[%c0_4, %c0_5] : memref<8x128xf32, #tpu.memory_space<vmem>>, vector<8x128xf32>
    %10 = arith.subf %0, %9 : vector<8x128xf32>
    %11 = arith.mulf %10, %10 : vector<8x128xf32>
    %cst_6 = arith.constant dense<0.000000e+00> : vector<8xf32>
    %12 = vector.multi_reduction <add>, %11, %cst_6 [1] : vector<8x128xf32> to vector<8xf32>
    %13 = vector.shape_cast %12 : vector<8xf32> to vector<8x1xf32>
    %cst_7 = arith.constant 7.812500e-07 : f32
    %14 = vector.broadcast %cst_7 : f32 to vector<8x1xf32>
    %15 = arith.addf %13, %14 : vector<8x1xf32>
    %16 = math.sqrt %15 : vector<8x1xf32>
    %cst_8 = arith.constant 5.000000e-01 : f32
    %17 = vector.broadcast %cst_8 : f32 to vector<8x1xf32>
    %18 = arith.addf %17, %8 : vector<8x1xf32>
    %19 = arith.subf %18, %16 : vector<8x1xf32>
    %cst_9 = arith.constant 0.000000e+00 : f32
    %20 = vector.broadcast %cst_9 : f32 to vector<8x1xf32>
    %21 = arith.maximumf %19, %20 : vector<8x1xf32>
    %c8_i32 = arith.constant 8 : i32
    %22 = arith.muli %arg0, %c8_i32 : i32
    %23 = tpu.iota {dimensions = array<i32: 0>} : vector<8x1xi32>
    %24 = vector.broadcast %22 : i32 to vector<8x1xi32>
    %25 = arith.addi %24, %23 : vector<8x1xi32>
    %c8_i32_10 = arith.constant 8 : i32
    %26 = vector.broadcast %c8_i32_10 : i32 to vector<8x1xi32>
    %27 = arith.cmpi slt, %25, %26 : vector<8x1xi32>
    %cst_11 = arith.constant 0.000000e+00 : f32
    %28 = vector.broadcast %cst_11 : f32 to vector<8x1xf32>
    %29 = arith.select %27, %21, %28 : vector<8x1xi1>, vector<8x1xf32>
    %30 = vector.shape_cast %29 : vector<8x1xf32> to vector<1x8x1xf32>
    %cst_12 = arith.constant dense<0.000000e+00> : vector<1xf32>
    %31 = vector.multi_reduction <add>, %30, %cst_12 [1, 2] : vector<1x8x1xf32> to vector<1xf32>
    %32 = vector.shape_cast %31 : vector<1xf32> to vector<1x1x1xf32>
    %33 = vector.extract %32[0, 0, 0] : f32 from vector<1x1x1xf32>
    %34 = vector.broadcast %33 : f32 to vector<1x8x128xf32>
    %c0_13 = arith.constant 0 : index
    %c0_14 = arith.constant 0 : index
    %c0_15 = arith.constant 0 : index
    %35 = vector.load %arg4[%c0_13, %c0_14, %c0_15] : memref<1x8x128xf32, #tpu.memory_space<vmem>>, vector<1x8x128xf32>
    tpu.vector_store %arg4[%c0_13, %c0_14, %c0_15], %34 {strides = array<i32>} : memref<1x8x128xf32, #tpu.memory_space<vmem>>, vector<1x8x128xf32>,
    return
  }
  func.func @transform_0(%arg0: i32) -> (i32, i32) {
    %c0_i32 = arith.constant 0 : i32
    %c0_i32_0 = arith.constant 0 : i32
    return %arg0, %c0_i32 : i32, i32
  }
  func.func @transform_1(%arg0: i32) -> (i32, i32) {
    %c0_i32 = arith.constant 0 : i32
    %c0_i32_0 = arith.constant 0 : i32
    return %arg0, %c0_i32 : i32, i32
  }
  func.func @transform_2(%arg0: i32) -> (i32, i32) {
    %c0_i32 = arith.constant 0 : i32
    %c0_i32_0 = arith.constant 0 : i32
    return %arg0, %c0_i32 : i32, i32
  }
  func.func @transform_3(%arg0: i32) -> (i32, i32, i32) {
    %c0_i32 = arith.constant 0 : i32
    %c0_i32_0 = arith.constant 0 : i32
    %c0_i32_1 = arith.constant 0 : i32
    return %arg0, %c0_i32, %c0_i32_0 : i32, i32, i32
  }
}

</mosaic_0001>

<bundles_post_ra>
// kernel: tpu_custom_call.1
= control target key start
LH: loop header
LB: loop body
LE: loop exit
PB: predicated region body
PF: predicated region fallthrough
CT: control target
= control target key end

     0   :  { %8 = vsyncpa [#allocation3], 0  ;;  %s292_s0 = inlined_call_operand.hbm [shape: f32[8,128], index: 0, kind: input, shape index: {}]   ;;  %s293_s1 = inlined_call_operand.hbm [shape: f32[8,128], index: 1, kind: input, shape index: {}]   ;;  %s294_s2 = inlined_call_operand.hbm [shape: f32[8,128], index: 2, kind: input, shape index: {}]   ;;  %s295_s3 = inlined_call_operand.hbm [shape: f32[1,8,128], index: 3, kind: output, shape index: {}]  }
   0x1   :  { %9 = vsyncpa [#allocation6], 0 }
   0x2   :  { %10 = vsyncpa [#allocation4], 0  ;;  %s220_s12 = smov [#allocation5]   ;;  %s221_s14 = smov [#allocation2]  }
   0x3   :  { %s27_s13 = sshll.u32 %s220_s12, 4  ;;  %s17_s15 = sshll.u32 %s221_s14, 4  ;;  %s28_s13 = int_to_ptr.vmem [resolvable:$true] %s27_s13  ;;  %s18_s15 = int_to_ptr.vmem [resolvable:$true] %s17_s15 }
   0x4   :  { %s126_s18 = scalar_lea.hbm %s293_s1, 128 }
   0x5   :  { %p127_p0 = scmp.ne.s32.totalorder %s293_s1, %s126_s18  ;;  %p130_p1 = scmp.lt.u32.totalorder %s126_s18, %s293_s1 }
   0x7   :  { %p132_p2 = pnand %p130_p1, %p127_p0 }
   0x9   :  { %135 = shalt.err (!%p132_p2)
}
   0xa   :  { %s136_s23 = scalar_lea.vmem %s28_s13, 128  ;;  %p141_p4 = scmp.lt.s32.totalorder %s28_s13, %s28_s13 }
   0xb   :  { %p137_p3 = scmp.ne.s32.totalorder %s28_s13, %s136_s23  ;;  %p142_p5 = scmp.lt.s32.totalorder %s136_s23, %s136_s23 }
   0xd   :  { %p143_p6 = por %p142_p5, %p141_p4 }
   0xf   :  { %p144_p7 = pnand %p143_p6, %p137_p3 }
  0x11   :  { %147 = shalt.err (!%p144_p7)
}
  0x12   :  { %30 = dma.hbm_to_vmem [thread:$0]  %s293_s1, 128, %s28_s13, [#allocation6]  }
  0x13   :  { %s148_s28 = scalar_lea.hbm %s292_s0, 128 }
  0x14   :  { %p149_p8 = scmp.ne.s32.totalorder %s292_s0, %s148_s28  ;;  %p152_p9 = scmp.lt.u32.totalorder %s148_s28, %s292_s0 }
  0x16   :  { %p154_p10 = pnand %p152_p9, %p149_p8 }
  0x18   :  { %157 = shalt.err (!%p154_p10)
}
  0x19   :  { %s158_s6 = scalar_lea.vmem %s18_s15, 128  ;;  %p163_p12 = scmp.lt.s32.totalorder %s18_s15, %s18_s15 }
  0x1a   :  { %p159_p11 = scmp.ne.s32.totalorder %s18_s15, %s158_s6  ;;  %p164_p13 = scmp.lt.s32.totalorder %s158_s6, %s158_s6 }
  0x1c   :  { %p165_p0 = por %p164_p13, %p163_p12 }
  0x1e   :  { %p166_p1 = pnand %p165_p0, %p159_p11 }
  0x20   :  { %169 = shalt.err (!%p166_p1)
}
  0x21   :  { %20 = dma.hbm_to_vmem [thread:$0]  %s292_s0, 128, %s18_s15, [#allocation3]  }
  0x22   :  { %s222_s8 = smov [#allocation7]   ;;  %s170_s12 = scalar_lea.hbm %s294_s2, 128 }
  0x23   :  { %s37_s9 = sshll.u32 %s222_s8, 4  ;;  %p171_p2 = scmp.ne.s32.totalorder %s294_s2, %s170_s12  ;;  %s38_s9 = int_to_ptr.vmem [resolvable:$true] %s37_s9 }
  0x24   :  { %p174_p3 = scmp.lt.u32.totalorder %s170_s12, %s294_s2 }
  0x26   :  { %p176_p4 = pnand %p174_p3, %p171_p2 }
  0x28   :  { %179 = shalt.err (!%p176_p4)
}
  0x29   :  { %s180_s18 = scalar_lea.vmem %s38_s9, 128  ;;  %p185_p6 = scmp.lt.s32.totalorder %s38_s9, %s38_s9 }
  0x2a   :  { %p181_p5 = scmp.ne.s32.totalorder %s38_s9, %s180_s18  ;;  %p186_p7 = scmp.lt.s32.totalorder %s180_s18, %s180_s18 }
  0x2c   :  { %p187_p8 = por %p186_p7, %p185_p6 }
  0x2e   :  { %p188_p9 = pnand %p187_p8, %p181_p5 }
  0x30   :  { %191 = shalt.err (!%p188_p9)
}
  0x31   :  { %40 = dma.hbm_to_vmem [thread:$0]  %s294_s2, 128, %s38_s9, [#allocation6]  }
  0x32   :  { %214 = dma.done.wait [#allocation3], 128  }
  0x33   :  { %215 = vsyncadd [#allocation3], 4294967168 }
  0x34   :  { %216 = dma.done.wait [#allocation6], 256  }
  0x35   :  { %217 = vsyncadd [#allocation6], 4294967040  ;;  %v50_v0 = vld [vmem:[#allocation2] sm:$0xff]  ;;  %v51_v1 = vld [vmem:[#allocation5] sm:$0xff]  ;;  %vm87_vm4 = vcmask 7168   ;;  %s223_s2 = smov [#allocation8]  }
  0x36   :  { %v64_v2 = vld [vmem:[#allocation7] sm:$0xff]  ;;  %v52_v3 = vsub.f32 %v50_v0, %v51_v1  ;;  %s106_s19 = sshll.u32 %s223_s2, 4  ;;  %s107_s19 = int_to_ptr.vmem [resolvable:$true] %s106_s19 }
  0x37   :  { %v65_v4 = vsub.f32 %v50_v0, %v64_v2  ;;  %s192_s21 = scalar_lea.vmem %s107_s19, 128  ;;  %p197_p11 = scmp.lt.s32.totalorder %s107_s19, %s107_s19 }
  0x38   :  { %v53_v5 = vmul.f32 %v52_v3, %v52_v3  ;;  %p193_p10 = scmp.ne.s32.totalorder %s107_s19, %s192_s21  ;;  %p198_p12 = scmp.lt.s32.totalorder %s192_s21, %s192_s21 }
  0x39   :  { %v66_v6 = vmul.f32 %v65_v4, %v65_v4 }
  0x3a   :  { %54 = vadd.xlane.f32.xlu0 %v53_v5  ;;  %p199_p13 = por %p198_p12, %p197_p11 }
  0x3c   :  { %p200_p0 = pnand %p199_p13, %p193_p10 }
  0x3e   :  { %67 = vadd.xlane.f32.xlu0 %v66_v6 }
  0xc7   :  { %v55_v7 = vpop.xlane.xlu0 %54 }
  0xc8   :  { %v56_v8 = vadd.f32 7.8125e-07, %v55_v7 }
  0xca   :  { %122 = vrsqrt.f32 %v56_v8  ;;  %vm59_vm0 = vcmp.eq.f32.partialorder %v56_v8, inf  ;;  %v62_v13 = vand.u32 2147483648, %v56_v8  ;;  %vm61_vm1 = vcmp.eq.f32.partialorder %v56_v8, 0.0 }
  0xcb   :  { %v68_v9 = vpop.xlane.xlu0 %67 }
  0xcc   :  { %v69_v10 = vadd.f32 7.8125e-07, %v68_v9 }
  0xce   :  { %124 = vrsqrt.f32 %v69_v10  ;;  %vm72_vm2 = vcmp.eq.f32.partialorder %v69_v10, inf  ;;  %v75_v18 = vand.u32 2147483648, %v69_v10  ;;  %vm74_vm3 = vcmp.eq.f32.partialorder %v69_v10, 0.0 }
  0xd4   :  { %v123_v11 = vpop.eup %122 }
  0xd5   :  { %v58_v12 = vmul.f32 %v123_v11, %v56_v8 }
  0xd7   :  { %v60_v14 = vsel %vm59_vm0, %v56_v8, %v58_v12 }
  0xd8   :  { %v125_v15 = vpop.eup %124  ;;  %v63_v16 = vsel %vm61_vm1, %v62_v13, %v60_v14 }
  0xd9   :  { %v71_v17 = vmul.f32 %v125_v15, %v69_v10  ;;  %v77_v20 = vadd.f32 0.5, %v63_v16 }
  0xdb   :  { %v73_v19 = vsel %vm72_vm2, %v69_v10, %v71_v17 }
  0xdc   :  { %v76_v21 = vsel %vm74_vm3, %v75_v18, %v73_v19 }
  0xdd   :  { %v78_v22 = vsub.f32 %v77_v20, %v76_v21 }
  0xdf   :  { %v79_v23 = vmax.f32 %v78_v22, 0.0 }
  0xe1   :  { %v88_v24 = vsel %vm87_vm4, %v79_v23, 0.0 }
  0xe2   :  { %89 = vadd.xlane.f32.xlu1 %v88_v24 }
 0x16f   :  { %v90_v25 = vpop.xlane.xlu1 %89 }
 0x170   :  { %v91_v26 = vrot.slane %v90_v25, 4 }
 0x172   :  { %v92_v27 = vadd.f32 %v91_v26, %v90_v25 }
 0x174   :  { %v93_v28 = vrot.slane %v92_v27, 2 }
 0x176   :  { %v94_v29 = vadd.f32 %v93_v28, %v92_v27 }
 0x178   :  { %v95_v30 = vrot.slane %v94_v29, 1 }
 0x17a   :  { %v96_v31 = vadd.f32 %v95_v30, %v94_v29 }
 0x17c   :  { %116 = vpush %v96_v31 }
 0x1ad   :  { %s117_s20 = spop %116 }
 0x1ae   :  { %v98_v32 = vstv %s117_s20 }
 0x1af   :  { %99 = vst [vmem:[#allocation8] sm:$0xff] %v98_v32 }
 0x1b0   :  { %203 = shalt.err (!%p200_p0)
}
 0x1b1   :  { %s204_s24 = scalar_lea.hbm %s295_s3, 128 }
 0x1b2   :  { %p205_p1 = scmp.ne.s32.totalorder %s295_s3, %s204_s24  ;;  %p208_p2 = scmp.lt.u32.totalorder %s204_s24, %s295_s3 }
 0x1b4   :  { %p210_p3 = pnand %p208_p2, %p205_p1 }
 0x1b6   :  { %213 = shalt.err (!%p210_p3)
}
 0x1b7   :  { %109 = dma.vmem_to_hbm [thread:$0]  %s107_s19, 128, %s295_s3, [#allocation4]  }
 0x1b8   :  { %218 = dma.done.wait [#allocation4], 128  }
 0x1b9   :  { %219 = vsyncadd [#allocation4], 4294967168 }
 0x1ba   :  { %113 = vsyncpa [#allocation3], 1 }
 0x1bb   :  { %114 = vsyncpa [#allocation6], 1 }
 0x1bc   :  { %115 = vsyncpa [#allocation4], 1 }

</bundles_post_ra>
